<compile_context>
chip_gen: v7x
topology: tpu7x:2x2x1
jax: 0.10.0
libtpu: 0.0.40
codegen_flags: <defaults>
</compile_context>

<pallas_src>
import functools
import math

import jax
import jax.numpy as jnp
import numpy as np
from jax.experimental import pallas as pl
from jax.experimental.pallas import tpu as pltpu


def _bev_kernel(m_tbl, n_tbl, first_tbl, live_tbl,
                featT_ref, zidx_ref, flat_ref, w_ref, bias_ref,
                out_ref, iota_ref, *, n_slices, fuse_stage_a, compute_dtype):
    """One live (m_tile, n_block) pair.

    m_tbl/n_tbl/first_tbl/live_tbl : SMEM (num_pairs,) i32 pair tables
    featT_ref : (Cin, TILE_N)      compute_dtype  features, transposed
    zidx_ref  : (1, TILE_N)        i32            kernel-slice index per point
    flat_ref  : (TILE_N, 1)        i32            flattened dense destination
    w_ref     : (K*Cout, Cin)      compute_dtype  kernel, per-slice transposed
    bias_ref  : (Cout, 1)          f32
    out_ref   : (Cout, TILE_M)     f32            resident transposed BEV tile
    iota_ref  : (TILE_N, TILE_M)   i32 scratch    hoisted column-index table
    """
    p = pl.program_id(0)

    # One-time fill of the column-index table used by the scatter one-hot.
    @pl.when(p == 0)
    def _fill_iota():
        iota_ref[...] = jax.lax.broadcasted_iota(jnp.int32, iota_ref.shape, 1)

    # Zero the resident accumulator on the first pair of every output tile.
    @pl.when(first_tbl[p] == 1)
    def _init():
        out_ref[...] = jnp.zeros_like(out_ref)

    # Pairs that carry real points (empty-tile dummies / table padding skip).
    @pl.when(live_tbl[p] == 1)
    def _step():
        cout, tile_m = out_ref.shape
        featT = featT_ref[...]                      # (Cin, TILE_N)
        zidx = zidx_ref[...]                        # (1, TILE_N) i32

        # --- stage A: per-point kernel-slice matmul + select -----------------
        if fuse_stage_a:
            allT = jnp.dot(w_ref[...], featT,
                           preferred_element_type=jnp.float32)  # (K*Cout, TILE_N)
            sfT = allT[0:cout, :]
            for kk in range(1, n_slices):
                sfT = jnp.where(zidx == kk, allT[kk * cout:(kk + 1) * cout, :], sfT)
        else:
            # Per-slice dots: same MXU FLOPs, no (K*Cout, TILE_N) intermediate.
            sfT = jnp.dot(w_ref[pl.ds(0, cout), :], featT,
                          preferred_element_type=jnp.float32)
            for kk in range(1, n_slices):
                part = jnp.dot(w_ref[pl.ds(kk * cout, cout), :], featT,
                               preferred_element_type=jnp.float32)
                sfT = jnp.where(zidx == kk, part, sfT)
        sfT = sfT + bias_ref[...]                   # (Cout, TILE_N) f32

        # --- stage B: tile-local scatter-add (duplicates sum) as one-hot dot -
        m_base = m_tbl[p] * tile_m
        eq = (flat_ref[...] - m_base) == iota_ref[...]          # (TILE_N, TILE_M)
        one = jnp.ones((), compute_dtype)
        zero = jnp.zeros((), compute_dtype)
        scat = jnp.where(eq, one, zero)                         # exact 0/1
        out_ref[...] += jnp.dot(sfT.astype(compute_dtype), scat,
                                preferred_element_type=jnp.float32)


def to_dense_bev_conv(features, coords, kernel, bias, *, shape, batch_size,
                      offset=(0, 0, 0), z_dim=1, cur_stride=1,
                      tile_m=128, tile_n=256,
                      compute_dtype=jnp.bfloat16, fuse_stage_a=None):
    """JAX wrapper mirroring ToDenseBEVConvolution.forward (NCHW output)."""
    shape = np.asarray(shape)
    bev_dims = [i for i in range(3) if i != z_dim]
    H, W = int(shape[bev_dims[0]]), int(shape[bev_dims[1]])
    K, Cin, Cout = int(kernel.shape[0]), int(kernel.shape[1]), int(kernel.shape[2])
    N = int(features.shape[0])
    if fuse_stage_a is None:
        fuse_stage_a = Cout < 64     # avoid a large (K*Cout, TILE_N) live intermediate

    M = batch_size * H * W
    num_mt = pl.cdiv(M, tile_m)
    M_pad = num_mt * tile_m
    num_nb = pl.cdiv(N, tile_n)
    N_pad = num_nb * tile_n
    num_pairs = num_mt + num_nb          # static bound on the live-pair staircase

    coords = coords.astype(jnp.int32)
    off = jnp.asarray(list(offset) + [0], jnp.int32)
    shifted = coords - off[None, :]

    zidx = (coords[:, z_dim] // cur_stride).astype(jnp.int32)   # un-shifted (as PyTorch)
    b = shifted[:, 3]
    c0 = shifted[:, bev_dims[0]] // cur_stride
    c1 = shifted[:, bev_dims[1]] // cur_stride
    flat = (b * (H * W) + c0 * W + c1).astype(jnp.int32)        # (N,)

    # Out-of-grid destinations are dropped (sentinel never matches any column).
    sentinel = jnp.int32(M_pad)
    flat = jnp.where((flat >= 0) & (flat < M), flat, sentinel)

    # Sort points by destination so every output tile sees a contiguous range.
    order = jnp.argsort(flat)
    feat_s = features.astype(compute_dtype)[order]
    zidx_s = zidx[order]
    flat_s = flat[order]

    pad = N_pad - N
    feat_s = jnp.pad(feat_s, ((0, pad), (0, 0)))
    zidx_s = jnp.pad(zidx_s, (0, pad))
    flat_s = jnp.pad(flat_s, (0, pad), constant_values=M_pad)

    # Per-output-tile range of point blocks -> static-length live-pair tables.
    dst_tile = flat_s // tile_m                                 # sentinel -> num_mt (dropped)
    blk = jnp.arange(N_pad, dtype=jnp.int32) // tile_n
    lo = jnp.full((num_mt,), num_nb, jnp.int32).at[dst_tile].min(blk, mode="drop")
    hi = jnp.full((num_mt,), -1, jnp.int32).at[dst_tile].max(blk, mode="drop")
    nonempty = hi >= lo
    cnt = jnp.where(nonempty, hi - lo + 1, 1)                   # empty tiles: 1 zero-only pair
    starts = jnp.concatenate([jnp.zeros((1,), jnp.int32),
                              jnp.cumsum(cnt)[:-1].astype(jnp.int32)])
    total = starts[-1] + cnt[-1]                                # <= num_mt + num_nb - 1

    pidx = jnp.arange(num_pairs, dtype=jnp.int32)
    m_of_p = jnp.cumsum(jnp.zeros((num_pairs,), jnp.int32).at[starts].add(1)) - 1
    m_of_p = jnp.clip(m_of_p.astype(jnp.int32), 0, num_mt - 1)
    local = pidx - starts[m_of_p]
    in_range = pidx < total
    m_tbl = m_of_p
    n_tbl = jnp.clip(jnp.where(nonempty[m_of_p], lo[m_of_p] + local, 0),
                     0, num_nb - 1).astype(jnp.int32)
    first_tbl = ((local == 0) & in_range).astype(jnp.int32)
    live_tbl = (nonempty[m_of_p] & in_range).astype(jnp.int32)

    # Lane-friendly layouts for the kernel.
    featT = feat_s.T                                            # (Cin, N_pad)
    zidx_row = zidx_s[None, :]                                  # (1, N_pad)
    flat_col = flat_s[:, None]                                  # (N_pad, 1)
    w_all_T = jnp.transpose(kernel.astype(compute_dtype), (0, 2, 1)).reshape(K * Cout, Cin)
    if bias is None or np.ndim(bias) == 0:
        bias_col = jnp.zeros((Cout, 1), jnp.float32)
    else:
        bias_col = jnp.asarray(bias, jnp.float32).reshape(Cout, 1)

    kern = functools.partial(_bev_kernel, n_slices=K, fuse_stage_a=fuse_stage_a,
                             compute_dtype=compute_dtype)

    grid_spec = pltpu.PrefetchScalarGridSpec(
        num_scalar_prefetch=4,
        grid=(num_pairs,),
        in_specs=[
            pl.BlockSpec((Cin, tile_n), lambda p, mt, nt, ft, lt: (0, nt[p])),
            pl.BlockSpec((1, tile_n), lambda p, mt, nt, ft, lt: (0, nt[p])),
            pl.BlockSpec((tile_n, 1), lambda p, mt, nt, ft, lt: (nt[p], 0)),
            pl.BlockSpec((K * Cout, Cin), lambda p, mt, nt, ft, lt: (0, 0)),
            pl.BlockSpec((Cout, 1), lambda p, mt, nt, ft, lt: (0, 0)),
        ],
        out_specs=pl.BlockSpec((Cout, tile_m), lambda p, mt, nt, ft, lt: (0, mt[p])),
        scratch_shapes=[pltpu.VMEM((tile_n, tile_m), jnp.int32)],
    )

    cost = pl.CostEstimate(
        flops=int(2 * num_pairs * tile_n * (K * Cin * Cout + Cout * tile_m)),
        transcendentals=0,
        bytes_accessed=int(featT.size * featT.dtype.itemsize
                           + w_all_T.size * w_all_T.dtype.itemsize
                           + 4 * (zidx_row.size + flat_col.size + Cout
                                  + 4 * num_pairs + Cout * M_pad)),
    )

    dense_T = pl.pallas_call(
        kern,
        out_shape=jax.ShapeDtypeStruct((Cout, M_pad), jnp.float32),
        grid_spec=grid_spec,
        compiler_params=pltpu.CompilerParams(
            dimension_semantics=("arbitrary",),
            vmem_limit_bytes=48 * 1024 * 1024,   # safe on v7x (64 MiB physical)
        ),
        cost_estimate=cost,
    )(m_tbl, n_tbl, first_tbl, live_tbl,
      featT, zidx_row, flat_col, w_all_T, bias_col)

    # (Cout, B*H*W) -> (Cout, B, H, W) -> NCHW (B, Cout, H, W)
    dense_T = dense_T[:, :M]
    return dense_T.reshape(Cout, batch_size, H, W).transpose(1, 0, 2, 3)


def _reference(features, coords, kernel, bias, *, shape, batch_size, offset,
               z_dim, cur_stride):
    """Pure-JAX f32 reference of the PyTorch forward for validation."""
    shape = np.asarray(shape)
    bev_dims = [i for i in range(3) if i != z_dim]
    H, W = int(shape[bev_dims[0]]), int(shape[bev_dims[1]])
    Cout = kernel.shape[-1]
    zidx = coords[:, z_dim] // cur_stride
    kernels = kernel[zidx]                                        # (N,Cin,Cout)
    sf = (features[:, :, None] * kernels).sum(1) + bias           # (N,Cout)
    off = jnp.asarray(list(offset) + [0], jnp.int32)
    shifted = coords - off[None, :]
    b = shifted[:, 3]
    c0 = shifted[:, bev_dims[0]] // cur_stride
    c1 = shifted[:, bev_dims[1]] // cur_stride
    flat = b * (H * W) + c0 * W + c1
    dense = jnp.zeros((batch_size * H * W, Cout), jnp.float32).at[flat].add(sf)
    return dense.reshape(batch_size, H, W, Cout).transpose(0, 3, 1, 2)


if __name__ == "__main__":
    # module config (small, consistent with the module's __init__)
    in_channels, out_channels = 8, 16
    shape = np.array([16, 8, 16])      # 3-D voxel grid; z_dim = 1 -> K = 8, BEV = 16x16
    z_dim, cur_stride, offset = 1, 1, (0, 0, 0)
    n_kernels = int(shape[z_dim])
    batch, n_points = 2, 300           # M = 2*16*16 = 512 (4 M-tiles)

    key = jax.random.PRNGKey(0)
    k_feat, k_w, k_b, k_c0, k_c1, k_c2 = jax.random.split(key, 6)

    # deterministic parameter init: uniform(-1/sqrt(Cin), 1/sqrt(Cin))
    std = 1.0 / math.sqrt(in_channels)
    kernel = jax.random.uniform(k_w, (n_kernels, in_channels, out_channels),
                                jnp.float32, -std, std)
    bias = jax.random.uniform(k_b, (1, out_channels), jnp.float32, -std, std)

    # synthetic sparse input: features (N, Cin), coords (N, 4) = [c0, c1, c2, b]
    features = jax.random.normal(k_feat, (n_points, in_channels), jnp.float32)
    c0 = jax.random.randint(k_c0, (n_points,), 0, int(shape[0]), jnp.int32)
    c1 = jax.random.randint(k_c1, (n_points,), 0, int(shape[1]), jnp.int32)
    c2 = jax.random.randint(k_c2, (n_points,), 0, int(shape[2]), jnp.int32)
    bidx = jnp.arange(n_points, dtype=jnp.int32) % batch
    coords = jnp.stack([c0, c1, c2, bidx], axis=1)

    ref = _reference(features, coords, kernel, bias, shape=shape,
                     batch_size=batch, offset=offset, z_dim=z_dim,
                     cur_stride=cur_stride)

    # f32 path: exact check of the select / live-pair / scatter logic.
    out_f32 = to_dense_bev_conv(features, coords, kernel, bias, shape=shape,
                                batch_size=batch, offset=offset, z_dim=z_dim,
                                cur_stride=cur_stride,
                                compute_dtype=jnp.float32)
    out_f32 = jax.block_until_ready(out_f32)
    assert out_f32.shape == (batch, out_channels, int(shape[0]), int(shape[2])), out_f32.shape
    np.testing.assert_allclose(np.asarray(out_f32), np.asarray(ref),
                               rtol=1e-5, atol=1e-5)

    # bf16 fast path (default): bf16 MXU operands, f32 accumulation.
    out_bf16 = to_dense_bev_conv(features, coords, kernel, bias, shape=shape,
                                 batch_size=batch, offset=offset, z_dim=z_dim,
                                 cur_stride=cur_stride)
    out_bf16 = jax.block_until_ready(out_bf16)
    assert out_bf16.shape == out_f32.shape
    np.testing.assert_allclose(np.asarray(out_bf16), np.asarray(ref),
                               rtol=5e-2, atol=1e-1)

    print("KERNEL_OK")
</pallas_src>

<mosaic_0001>
module attributes {stable_mosaic.version = 11 : i64} {
  func.func @_bev_kernel(%arg0: i32, %arg1: memref<6xi32, #tpu.memory_space<smem>>, %arg2: memref<6xi32, #tpu.memory_space<smem>>, %arg3: memref<6xi32, #tpu.memory_space<smem>>, %arg4: memref<6xi32, #tpu.memory_space<smem>>, %arg5: memref<8x256xf32, #tpu.memory_space<vmem>>, %arg6: memref<1x256xi32, #tpu.memory_space<vmem>>, %arg7: memref<256x1xi32, #tpu.memory_space<vmem>>, %arg8: memref<128x8xf32, #tpu.memory_space<vmem>>, %arg9: memref<16x1xf32, #tpu.memory_space<vmem>>, %arg10: memref<16x128xf32, #tpu.memory_space<vmem>>, %arg11: memref<256x128xi32, #tpu.memory_space<vmem>>) attributes {dimension_semantics = [#tpu.dimension_semantics<arbitrary>], iteration_bounds = array<i64: 6>, scalar_prefetch = 4 : i64, scratch_operands = 1 : i64, tpu.core_type = #tpu.core_type<tc>, window_params = [{transform_indices = @transform_0, window_bounds = array<i64: 8, 256>}, {transform_indices = @transform_1, window_bounds = array<i64: 1, 256>}, {transform_indices = @transform_2, window_bounds = array<i64: 256, 1>}, {pipeline_mode = #tpu.pipeline_mode<synchronous>, transform_indices = @transform_3, window_bounds = array<i64: 128, 8>}, {pipeline_mode = #tpu.pipeline_mode<synchronous>, transform_indices = @transform_4, window_bounds = array<i64: 16, 1>}, {transform_indices = @transform_5, window_bounds = array<i64: 16, 128>}]} {
    %c0_i32 = arith.constant 0 : i32
    %0 = arith.cmpi eq, %arg0, %c0_i32 : i32
    %1 = arith.extui %0 : i1 to i32
    %c0_i32_0 = arith.constant 0 : i32
    %2 = arith.cmpi ne, %1, %c0_i32_0 : i32
    scf.if %2 {
      %13 = tpu.iota {dimensions = array<i32: 1>} : vector<256x128xi32>
      %c0 = arith.constant 0 : index
      %c0_4 = arith.constant 0 : index
      %14 = vector.load %arg11[%c0, %c0_4] : memref<256x128xi32, #tpu.memory_space<vmem>>, vector<256x128xi32>
      tpu.vector_store %arg11[%c0, %c0_4], %13 {strides = array<i32>} : memref<256x128xi32, #tpu.memory_space<vmem>>, vector<256x128xi32>,
    } else {
    }
    %3 = arith.index_cast %arg0 : i32 to index
    %4 = memref.load %arg3[%3] : memref<6xi32, #tpu.memory_space<smem>>
    %c1_i32 = arith.constant 1 : i32
    %5 = arith.cmpi eq, %4, %c1_i32 : i32
    %6 = arith.extui %5 : i1 to i32
    %c0_i32_1 = arith.constant 0 : i32
    %7 = arith.cmpi ne, %6, %c0_i32_1 : i32
    scf.if %7 {
      %cst = arith.constant 0.000000e+00 : f32
      %13 = vector.broadcast %cst : f32 to vector<16x128xf32>
      %c0 = arith.constant 0 : index
      %c0_4 = arith.constant 0 : index
      %14 = vector.load %arg10[%c0, %c0_4] : memref<16x128xf32, #tpu.memory_space<vmem>>, vector<16x128xf32>
      tpu.vector_store %arg10[%c0, %c0_4], %13 {strides = array<i32>} : memref<16x128xf32, #tpu.memory_space<vmem>>, vector<16x128xf32>,
    } else {
    }
    %8 = arith.index_cast %arg0 : i32 to index
    %9 = memref.load %arg4[%8] : memref<6xi32, #tpu.memory_space<smem>>
    %c1_i32_2 = arith.constant 1 : i32
    %10 = arith.cmpi eq, %9, %c1_i32_2 : i32
    %11 = arith.extui %10 : i1 to i32
    %c0_i32_3 = arith.constant 0 : i32
    %12 = arith.cmpi ne, %11, %c0_i32_3 : i32
    scf.if %12 {
      %c0 = arith.constant 0 : index
      %c0_4 = arith.constant 0 : index
      %13 = vector.load %arg5[%c0, %c0_4] : memref<8x256xf32, #tpu.memory_space<vmem>>, vector<8x256xf32>
      %c0_5 = arith.constant 0 : index
      %c0_6 = arith.constant 0 : index
      %14 = vector.load %arg6[%c0_5, %c0_6] : memref<1x256xi32, #tpu.memory_space<vmem>>, vector<1x256xi32>
      %c0_7 = arith.constant 0 : index
      %c0_8 = arith.constant 0 : index
      %15 = vector.load %arg8[%c0_7, %c0_8] : memref<128x8xf32, #tpu.memory_space<vmem>>, vector<128x8xf32>
      %cst = arith.constant dense<0.000000e+00> : vector<128x256xf32>
      %16 = tpu.matmul %15, %13, %cst {dimension_numbers = #tpu.dot_dimension_numbers<[1], [0], [0], [1], [0, 0, 1, 1], [], []>} : vector<128x8xf32>, vector<8x256xf32>, vector<128x256xf32> -> vector<128x256xf32>
      %17 = vector.extract_strided_slice %16 {offsets = [0, 0], sizes = [16, 256], strides = [1, 1]} : vector<128x256xf32> to vector<16x256xf32>
      %c1_i32_9 = arith.constant 1 : i32
      %18 = vector.broadcast %c1_i32_9 : i32 to vector<1x256xi32>
      %19 = arith.cmpi eq, %14, %18 : vector<1x256xi32>
      %20 = vector.extract_strided_slice %16 {offsets = [16, 0], sizes = [16, 256], strides = [1, 1]} : vector<128x256xf32> to vector<16x256xf32>
      %21 = vector.shape_cast %19 : vector<1x256xi1> to vector<1x256xi1>
      %22 = vector.broadcast %21 : vector<1x256xi1> to vector<16x256xi1>
      %23 = arith.select %22, %20, %17 : vector<16x256xi1>, vector<16x256xf32>
      %c2_i32 = arith.constant 2 : i32
      %24 = vector.broadcast %c2_i32 : i32 to vector<1x256xi32>
      %25 = arith.cmpi eq, %14, %24 : vector<1x256xi32>
      %26 = vector.extract_strided_slice %16 {offsets = [32, 0], sizes = [16, 256], strides = [1, 1]} : vector<128x256xf32> to vector<16x256xf32>
      %27 = vector.shape_cast %25 : vector<1x256xi1> to vector<1x256xi1>
      %28 = vector.broadcast %27 : vector<1x256xi1> to vector<16x256xi1>
      %29 = arith.select %28, %26, %23 : vector<16x256xi1>, vector<16x256xf32>
      %c3_i32 = arith.constant 3 : i32
      %30 = vector.broadcast %c3_i32 : i32 to vector<1x256xi32>
      %31 = arith.cmpi eq, %14, %30 : vector<1x256xi32>
      %32 = vector.extract_strided_slice %16 {offsets = [48, 0], sizes = [16, 256], strides = [1, 1]} : vector<128x256xf32> to vector<16x256xf32>
      %33 = vector.shape_cast %31 : vector<1x256xi1> to vector<1x256xi1>
      %34 = vector.broadcast %33 : vector<1x256xi1> to vector<16x256xi1>
      %35 = arith.select %34, %32, %29 : vector<16x256xi1>, vector<16x256xf32>
      %c4_i32 = arith.constant 4 : i32
      %36 = vector.broadcast %c4_i32 : i32 to vector<1x256xi32>
      %37 = arith.cmpi eq, %14, %36 : vector<1x256xi32>
      %38 = vector.extract_strided_slice %16 {offsets = [64, 0], sizes = [16, 256], strides = [1, 1]} : vector<128x256xf32> to vector<16x256xf32>
      %39 = vector.shape_cast %37 : vector<1x256xi1> to vector<1x256xi1>
      %40 = vector.broadcast %39 : vector<1x256xi1> to vector<16x256xi1>
      %41 = arith.select %40, %38, %35 : vector<16x256xi1>, vector<16x256xf32>
      %c5_i32 = arith.constant 5 : i32
      %42 = vector.broadcast %c5_i32 : i32 to vector<1x256xi32>
      %43 = arith.cmpi eq, %14, %42 : vector<1x256xi32>
      %44 = vector.extract_strided_slice %16 {offsets = [80, 0], sizes = [16, 256], strides = [1, 1]} : vector<128x256xf32> to vector<16x256xf32>
      %45 = vector.shape_cast %43 : vector<1x256xi1> to vector<1x256xi1>
      %46 = vector.broadcast %45 : vector<1x256xi1> to vector<16x256xi1>
      %47 = arith.select %46, %44, %41 : vector<16x256xi1>, vector<16x256xf32>
      %c6_i32 = arith.constant 6 : i32
      %48 = vector.broadcast %c6_i32 : i32 to vector<1x256xi32>
      %49 = arith.cmpi eq, %14, %48 : vector<1x256xi32>
      %50 = vector.extract_strided_slice %16 {offsets = [96, 0], sizes = [16, 256], strides = [1, 1]} : vector<128x256xf32> to vector<16x256xf32>
      %51 = vector.shape_cast %49 : vector<1x256xi1> to vector<1x256xi1>
      %52 = vector.broadcast %51 : vector<1x256xi1> to vector<16x256xi1>
      %53 = arith.select %52, %50, %47 : vector<16x256xi1>, vector<16x256xf32>
      %c7_i32 = arith.constant 7 : i32
      %54 = vector.broadcast %c7_i32 : i32 to vector<1x256xi32>
      %55 = arith.cmpi eq, %14, %54 : vector<1x256xi32>
      %56 = vector.extract_strided_slice %16 {offsets = [112, 0], sizes = [16, 256], strides = [1, 1]} : vector<128x256xf32> to vector<16x256xf32>
      %57 = vector.shape_cast %55 : vector<1x256xi1> to vector<1x256xi1>
      %58 = vector.broadcast %57 : vector<1x256xi1> to vector<16x256xi1>
      %59 = arith.select %58, %56, %53 : vector<16x256xi1>, vector<16x256xf32>
      %c0_10 = arith.constant 0 : index
      %c0_11 = arith.constant 0 : index
      %60 = vector.load %arg9[%c0_10, %c0_11] : memref<16x1xf32, #tpu.memory_space<vmem>>, vector<16x1xf32>
      %61 = vector.broadcast %60 : vector<16x1xf32> to vector<16x256xf32>
      %62 = arith.addf %59, %61 : vector<16x256xf32>
      %63 = arith.index_cast %arg0 : i32 to index
      %64 = memref.load %arg1[%63] : memref<6xi32, #tpu.memory_space<smem>>
      %c128_i32 = arith.constant 128 : i32
      %65 = arith.muli %64, %c128_i32 : i32
      %c0_12 = arith.constant 0 : index
      %c0_13 = arith.constant 0 : index
      %66 = vector.load %arg7[%c0_12, %c0_13] : memref<256x1xi32, #tpu.memory_space<vmem>>, vector<256x1xi32>
      %67 = vector.broadcast %65 : i32 to vector<256x1xi32>
      %68 = arith.subi %66, %67 : vector<256x1xi32>
      %c0_14 = arith.constant 0 : index
      %c0_15 = arith.constant 0 : index
      %69 = vector.load %arg11[%c0_14, %c0_15] : memref<256x128xi32, #tpu.memory_space<vmem>>, vector<256x128xi32>
      %70 = vector.broadcast %68 : vector<256x1xi32> to vector<256x128xi32>
      %71 = arith.cmpi eq, %70, %69 : vector<256x128xi32>
      %cst_16 = arith.constant 1.000000e+00 : f32
      %cst_17 = arith.constant 0.000000e+00 : f32
      %72 = vector.broadcast %cst_16 : f32 to vector<256x128xf32>
      %73 = vector.broadcast %cst_17 : f32 to vector<256x128xf32>
      %74 = arith.select %71, %72, %73 : vector<256x128xi1>, vector<256x128xf32>
      %c0_18 = arith.constant 0 : index
      %c0_19 = arith.constant 0 : index
      %75 = vector.load %arg10[%c0_18, %c0_19] : memref<16x128xf32, #tpu.memory_space<vmem>>, vector<16x128xf32>
      %cst_20 = arith.constant dense<0.000000e+00> : vector<16x128xf32>
      %76 = tpu.matmul %62, %74, %cst_20 {dimension_numbers = #tpu.dot_dimension_numbers<[1], [0], [0], [1], [0, 0, 1, 1], [], []>} : vector<16x256xf32>, vector<256x128xf32>, vector<16x128xf32> -> vector<16x128xf32>
      %77 = arith.addf %75, %76 : vector<16x128xf32>
      %c0_21 = arith.constant 0 : index
      %c0_22 = arith.constant 0 : index
      %78 = vector.load %arg10[%c0_21, %c0_22] : memref<16x128xf32, #tpu.memory_space<vmem>>, vector<16x128xf32>
      tpu.vector_store %arg10[%c0_21, %c0_22], %77 {strides = array<i32>} : memref<16x128xf32, #tpu.memory_space<vmem>>, vector<16x128xf32>,
    } else {
    }
    return
  }
  func.func @transform_0(%arg0: i32, %arg1: memref<6xi32, #tpu.memory_space<smem>>, %arg2: memref<6xi32, #tpu.memory_space<smem>>, %arg3: memref<6xi32, #tpu.memory_space<smem>>, %arg4: memref<6xi32, #tpu.memory_space<smem>>) -> (i32, i32) {
    %0 = arith.index_cast %arg0 : i32 to index
    %1 = memref.load %arg2[%0] : memref<6xi32, #tpu.memory_space<smem>>
    %c0_i32 = arith.constant 0 : i32
    %c0_i32_0 = arith.constant 0 : i32
    return %c0_i32, %1 : i32, i32
  }
  func.func @transform_1(%arg0: i32, %arg1: memref<6xi32, #tpu.memory_space<smem>>, %arg2: memref<6xi32, #tpu.memory_space<smem>>, %arg3: memref<6xi32, #tpu.memory_space<smem>>, %arg4: memref<6xi32, #tpu.memory_space<smem>>) -> (i32, i32) {
    %0 = arith.index_cast %arg0 : i32 to index
    %1 = memref.load %arg2[%0] : memref<6xi32, #tpu.memory_space<smem>>
    %c0_i32 = arith.constant 0 : i32
    %c0_i32_0 = arith.constant 0 : i32
    return %c0_i32, %1 : i32, i32
  }
  func.func @transform_2(%arg0: i32, %arg1: memref<6xi32, #tpu.memory_space<smem>>, %arg2: memref<6xi32, #tpu.memory_space<smem>>, %arg3: memref<6xi32, #tpu.memory_space<smem>>, %arg4: memref<6xi32, #tpu.memory_space<smem>>) -> (i32, i32) {
    %0 = arith.index_cast %arg0 : i32 to index
    %1 = memref.load %arg2[%0] : memref<6xi32, #tpu.memory_space<smem>>
    %c0_i32 = arith.constant 0 : i32
    %c0_i32_0 = arith.constant 0 : i32
    return %1, %c0_i32 : i32, i32
  }
  func.func @transform_3(%arg0: i32, %arg1: memref<6xi32, #tpu.memory_space<smem>>, %arg2: memref<6xi32, #tpu.memory_space<smem>>, %arg3: memref<6xi32, #tpu.memory_space<smem>>, %arg4: memref<6xi32, #tpu.memory_space<smem>>) -> (i32, i32) {
    %c0_i32 = arith.constant 0 : i32
    %c0_i32_0 = arith.constant 0 : i32
    %c0_i32_1 = arith.constant 0 : i32
    return %c0_i32, %c0_i32_0 : i32, i32
  }
  func.func @transform_4(%arg0: i32, %arg1: memref<6xi32, #tpu.memory_space<smem>>, %arg2: memref<6xi32, #tpu.memory_space<smem>>, %arg3: memref<6xi32, #tpu.memory_space<smem>>, %arg4: memref<6xi32, #tpu.memory_space<smem>>) -> (i32, i32) {
    %c0_i32 = arith.constant 0 : i32
    %c0_i32_0 = arith.constant 0 : i32
    %c0_i32_1 = arith.constant 0 : i32
    return %c0_i32, %c0_i32_0 : i32, i32
  }
  func.func @transform_5(%arg0: i32, %arg1: memref<6xi32, #tpu.memory_space<smem>>, %arg2: memref<6xi32, #tpu.memory_space<smem>>, %arg3: memref<6xi32, #tpu.memory_space<smem>>, %arg4: memref<6xi32, #tpu.memory_space<smem>>) -> (i32, i32) {
    %0 = arith.index_cast %arg0 : i32 to index
    %1 = memref.load %arg1[%0] : memref<6xi32, #tpu.memory_space<smem>>
    %c0_i32 = arith.constant 0 : i32
    %c0_i32_0 = arith.constant 0 : i32
    return %c0_i32, %1 : i32, i32
  }
}

</mosaic_0001>

<bundles_post_ra>
// kernel: tpu_custom_call.1
= control target key start
LH: loop header
LB: loop body
LE: loop exit
PB: predicated region body
PF: predicated region fallthrough
CT: control target
= control target key end

     0   :  { %s1939_s0 = inlined_call_operand.vmem [shape: s32[6], index: 0, kind: input, shape index: {}]   ;;  %s1940_s4 = inlined_call_operand.vmem [shape: f32[8,512], index: 4, kind: input, shape index: {}]   ;;  %s1941_s5 = inlined_call_operand.vmem [shape: s32[1,512], index: 5, kind: input, shape index: {}]   ;;  %s1942_s6 = inlined_call_operand.vmem [shape: s32[512,1], index: 6, kind: input, shape index: {}]   ;;  %s1943_s7 = inlined_call_operand.vmem [shape: f32[128,8], index: 7, kind: input, shape index: {}]   ;;  %s1944_s8 = inlined_call_operand.vmem [shape: f32[16,1], index: 8, kind: input, shape index: {}]   ;;  %s1945_s9 = inlined_call_operand.hbm [shape: f32[16,512], index: 9, kind: output, shape index: {}]   ;;  %s1946_s1 = inlined_call_operand.vmem [shape: s32[6], index: 1, kind: input, shape index: {}]   ;;  %s1947_s2 = inlined_call_operand.vmem [shape: s32[6], index: 2, kind: input, shape index: {}]   ;;  %s1948_s3 = inlined_call_operand.vmem [shape: s32[6], index: 3, kind: input, shape index: {}]  }
   0x1   :  { %s14_s11 = sshll.u32 %s1939_s0, 4  ;;  %s18_s14 = sshll.u32 %s1946_s1, 4  ;;  %s15_s11 = int_to_ptr.vmem [resolvable:$true] %s14_s11  ;;  %s19_s14 = int_to_ptr.vmem [resolvable:$true] %s18_s14 }
   0x2   :  { %s1346_s15 = scalar_lea.vmem %s15_s11, 16  ;;  %p1351_p1 = scmp.lt.s32.totalorder %s15_s11, %s15_s11 }
   0x3   :  { %p1347_p0 = scmp.ne.s32.totalorder %s15_s11, %s1346_s15  ;;  %p1352_p2 = scmp.lt.s32.totalorder %s1346_s15, %s1346_s15 }
   0x5   :  { %p1353_p3 = por %p1352_p2, %p1351_p1 }
   0x7   :  { %p1354_p4 = pnand %p1353_p3, %p1347_p0 }
   0x9   :  { %1357 = shalt.err (!%p1354_p4)  }
   0xa   :  { %s1460_s16 = smov [#allocation4]   ;;  %s1358_s17 = scalar_lea.vmem %s19_s14, 16 }
   0xb   :  { %17 = dma.vmem_to_smem %s15_s11, 16, %s1460_s16, [#allocation3] }
   0xc   :  { %p1359_p5 = scmp.ne.s32.totalorder %s19_s14, %s1358_s17  ;;  %p1363_p6 = scmp.lt.s32.totalorder %s19_s14, %s19_s14 }
   0xd   :  { %p1364_p7 = scmp.lt.s32.totalorder %s1358_s17, %s1358_s17 }
   0xf   :  { %p1365_p8 = por %p1364_p7, %p1363_p6 }
  0x11   :  { %p1366_p9 = pnand %p1365_p8, %p1359_p5 }
  0x13   :  { %1369 = shalt.err (!%p1366_p9)  }
  0x14   :  { %s1461_s0 = smov [#allocation5]   ;;  %s22_s19 = sshll.u32 %s1947_s2, 4  ;;  %s23_s19 = int_to_ptr.vmem [resolvable:$true] %s22_s19 }
  0x15   :  { %21 = dma.vmem_to_smem %s19_s14, 16, %s1461_s0, [#allocation3] }
  0x16   :  { %s26_s22 = sshll.u32 %s1948_s3, 4  ;;  %s1370_s23 = scalar_lea.vmem %s23_s19, 16  ;;  %s27_s22 = int_to_ptr.vmem [resolvable:$true] %s26_s22 }
  0x17   :  { %p1371_p10 = scmp.ne.s32.totalorder %s23_s19, %s1370_s23  ;;  %p1375_p11 = scmp.lt.s32.totalorder %s23_s19, %s23_s19 }
  0x18   :  { %p1376_p12 = scmp.lt.s32.totalorder %s1370_s23, %s1370_s23 }
  0x1a   :  { %p1377_p13 = por %p1376_p12, %p1375_p11 }
  0x1c   :  { %p1378_p0 = pnand %p1377_p13, %p1371_p10 }
  0x1e   :  { %1381 = shalt.err (!%p1378_p0)  }
  0x1f   :  { %s1462_s24 = smov [#allocation6]   ;;  %s1382_s25 = scalar_lea.vmem %s27_s22, 16 }
  0x20   :  { %25 = dma.vmem_to_smem %s23_s19, 16, %s1462_s24, [#allocation3] }
  0x21   :  { %p1383_p1 = scmp.ne.s32.totalorder %s27_s22, %s1382_s25  ;;  %p1387_p2 = scmp.lt.s32.totalorder %s27_s22, %s27_s22 }
  0x22   :  { %p1388_p3 = scmp.lt.s32.totalorder %s1382_s25, %s1382_s25 }
  0x24   :  { %p1389_p4 = por %p1388_p3, %p1387_p2 }
  0x26   :  { %p1390_p5 = pnand %p1389_p4, %p1383_p1 }
  0x28   :  { %1393 = shalt.err (!%p1390_p5)  }
  0x29   :  { %s1463_s2 = smov [#allocation7]  }
  0x2a   :  { %29 = dma.vmem_to_smem %s27_s22, 16, %s1463_s2, [#allocation3] }
  0x2b   :  { %1438 = dma.done.wait [#allocation3], 64 }
  0x2c   :  { %1439 = vsyncadd [#allocation3], 4294967232 }
  0x2d   :  { %31 = sfence }
  0x2e   :  { %32 = vsyncpa [#allocation9], 0 }
  0x2f   :  { %34 = vsyncpa [#allocation9 + $0x1], 0  ;;  %s1534_s3 = smov 0   ;;  %s1536_s26 = smov 0  }
  0x30   :  { %s1538_s27 = smov 0   ;;  %s1540_s28 = smov 0  }
  0x31 LB: > { %s1555_s29 = sadd.s32 4294967295, %s1458_s28   ;;  %s1156_s30 = sadd.s32 4294967294, %s1458_s28   ;;  %s1458_s28 = sphi %s1540_s28, %s1970_s28   ;;  %s1454_s27 = sphi %s1538_s27, %s1969_s27   ;;  %s1450_s26 = sphi %s1536_s26, %s1968_s26   ;;  %s1446_s3 = sphi %s1534_s3, %s1967_s3  }
  0x32   : > { %s1559_s10 = sadd.s32 1, %s1458_s28   ;;  %s170_s11 = sld [smem:[#allocation4 + %s1458_s28]] }
  0x33   : > { %s171_s12 = sld [smem:[#allocation4 + %s1559_s10]]  ;;  %p185_p6 = scmp.ne.s32.totalorder %s1454_s27, %s1450_s26 }
  0x34   : > { %p186_p7 = scmp.eq.s32.totalorder %s1555_s29, 5  ;;  %p191_p8 = scmp.ne.s32.totalorder %s1450_s26, %s1446_s3 }
  0x35   : > { %p192_p9 = scmp.eq.s32.totalorder %s1156_s30, 5  ;;  %p1159_p11 = scmp.ge.s32.totalorder %s1458_s28, 1 }
  0x36   : > { %p1568_p10 = por %p186_p7, %p185_p6  ;;  %p248_p13 = scmp.lt.s32.totalorder %s1458_s28, 7 }
  0x37   : > { %p1573_p12 = por %p192_p9, %p191_p8  ;;  %s175_s15 = sadd.s32 1, %s1454_s27 }
  0x38   : > { %p249_p0 = pnand %p1159_p11, %p248_p13 }
  0x39   : > { %s172_s16 = ssub.s32 %s170_s11, %s171_s12  ;;  %s1949_s0 = sand.u32 (!%p249_p0), 1, %s1450_s26  }
  0x3a   : > { %p173_p1 = scmp.eq.s32.totalorder %s172_s16, 0  ;;  %252 = sbr.rel (%p249_p0) target bundleno = 634 (0x27a), region = 40 }
  0x3b   : > { %s288_s1 = sld [smem:[#allocation5 + %s1555_s29]] (!%p249_p0)  ;;  %s1160_s18 = sshll.u32 (!%p249_p0), %s1949_s0, 4 }
  0x3c   : > { %s1580_s17 = scalar_select %p173_p1, %s1454_s27, %s175_s15  }
  0x3d   : > { %s296_s19 = sld [smem:[#allocation5 + %s1555_s29]] (!%p249_p0)  ;;  %s1604_s0 = scalar_lea.vmem (!%p249_p0), [#allocation8], %s1160_s18 }
  0x3e   : > { %s303_s20 = sld [smem:[#allocation5 + %s1555_s29]] (!%p249_p0)  ;;  %p1166_p5 = scmp.ne.s32.totalorder (!%p249_p0), %s1555_s29, 0 }
  0x41   : > { %s1161_s21 = sshll.u32 %s288_s1, 1  ;;  %v316_v0 = vlaneseq (!%p1166_p5) }
  0x42   : > { %p290_p2 = scmp.lt.s32.totalorder %s1161_s21, 3 }
  0x43   : > { %s1163_s22 = sshll.u32 %s296_s19, 1  ;;  %v317_v1 = vand.u32 (!%p1166_p5), 127, %v316_v0 }
  0x44   : > { %p298_p3 = scmp.lt.s32.totalorder %s1163_s22, 3  ;;  %s1164_s23 = sshll.u32 %s303_s20, 5 }
  0x45   : > { %s1972_s21 = smov (!%p290_p2, %s1161_s21), 3  ;;  %p305_p4 = scmp.lt.s32.totalorder %s1164_s23, 63  ;;  %318 = vst [vmem:[#allocation2] sm:$0xff] (!%p1166_p5), %v317_v1  ;;  %319 = vst [vmem:[#allocation2 + $0x8] sm:$0xff] (!%p1166_p5), %v317_v1 }
  0x46   : > { %s1974_s22 = smov (!%p298_p3, %s1163_s22), 3  ;;  %s1162_s24 = sshll.u32 %s1972_s21, 3  ;;  %320 = vst [vmem:[#allocation2 + $0x10] sm:$0xff] (!%p1166_p5), %v317_v1  ;;  %321 = vst [vmem:[#allocation2 + $0x18] sm:$0xff] (!%p1166_p5), %v317_v1 }
  0x47   : > { %s1593_s30 = scalar_lea.vmem %s1940_s4, %s1162_s24  ;;  %s300_s15 = scalar_lea.vmem %s1941_s5, %s1974_s22  ;;  %322 = vst [vmem:[#allocation2 + $0x20] sm:$0xff] (!%p1166_p5), %v317_v1  ;;  %323 = vst [vmem:[#allocation2 + $0x28] sm:$0xff] (!%p1166_p5), %v317_v1 }
  0x48   : > { %s1976_s23 = smov (!%p305_p4, %s1164_s23), 63  ;;  %315 = sbr.rel (%p1166_p5) target bundleno = 86 (0x56), region = 44 }
  0x49   : > { %s1165_s16 = sshll.u32 %s1976_s23, 3  ;;  %324 = vst [vmem:[#allocation2 + $0x30] sm:$0xff] (!%p1166_p5), %v317_v1  ;;  %325 = vst [vmem:[#allocation2 + $0x38] sm:$0xff] (!%p1166_p5), %v317_v1 }
  0x4a   : > { %s1602_s20 = scalar_lea.vmem %s1942_s6, %s1165_s16  ;;  %326 = vst [vmem:[#allocation2 + $0x40] sm:$0xff] (!%p1166_p5), %v317_v1  ;;  %327 = vst [vmem:[#allocation2 + $0x48] sm:$0xff] (!%p1166_p5), %v317_v1 }
  0x4b   : > { %328 = vst [vmem:[#allocation2 + $0x50] sm:$0xff] (!%p1166_p5), %v317_v1  ;;  %329 = vst [vmem:[#allocation2 + $0x58] sm:$0xff] (!%p1166_p5), %v317_v1 }
  0x4c   : > { %330 = vst [vmem:[#allocation2 + $0x60] sm:$0xff] (!%p1166_p5), %v317_v1  ;;  %331 = vst [vmem:[#allocation2 + $0x68] sm:$0xff] (!%p1166_p5), %v317_v1 }
  0x4d   : > { %332 = vst [vmem:[#allocation2 + $0x70] sm:$0xff] (!%p1166_p5), %v317_v1  ;;  %333 = vst [vmem:[#allocation2 + $0x78] sm:$0xff] (!%p1166_p5), %v317_v1 }
  0x4e   : > { %334 = vst [vmem:[#allocation2 + $0x80] sm:$0xff] (!%p1166_p5), %v317_v1  ;;  %335 = vst [vmem:[#allocation2 + $0x88] sm:$0xff] (!%p1166_p5), %v317_v1 }
  0x4f   : > { %336 = vst [vmem:[#allocation2 + $0x90] sm:$0xff] %v317_v1  ;;  %337 = vst [vmem:[#allocation2 + $0x98] sm:$0xff] %v317_v1 }
  0x50   : > { %338 = vst [vmem:[#allocation2 + $0xa0] sm:$0xff] %v317_v1  ;;  %339 = vst [vmem:[#allocation2 + $0xa8] sm:$0xff] %v317_v1 }
  0x51   : > { %340 = vst [vmem:[#allocation2 + $0xb0] sm:$0xff] %v317_v1  ;;  %341 = vst [vmem:[#allocation2 + $0xb8] sm:$0xff] %v317_v1 }
  0x52   : > { %342 = vst [vmem:[#allocation2 + $0xc0] sm:$0xff] %v317_v1  ;;  %343 = vst [vmem:[#allocation2 + $0xc8] sm:$0xff] %v317_v1 }
  0x53   : > { %344 = vst [vmem:[#allocation2 + $0xd0] sm:$0xff] %v317_v1  ;;  %345 = vst [vmem:[#allocation2 + $0xd8] sm:$0xff] %v317_v1 }
  0x54   : > { %346 = vst [vmem:[#allocation2 + $0xe0] sm:$0xff] %v317_v1  ;;  %347 = vst [vmem:[#allocation2 + $0xe8] sm:$0xff] %v317_v1 }
  0x55   : > { %348 = vst [vmem:[#allocation2 + $0xf0] sm:$0xff] %v317_v1  ;;  %349 = vst [vmem:[#allocation2 + $0xf8] sm:$0xff] %v317_v1 }
  0x56 PF: > { %s350_s18 = sld [smem:[#allocation6 + %s1555_s29]] }
  0x5c   : > { %p1167_p6 = scmp.ne.s32.totalorder %s350_s18, 1 }
  0x5d   : > { %v1464_v2 = vmov (!%p1167_p6), 0.0  }
  0x5e   : > { %354 = sbr.rel (%p1167_p6) target bundleno = 101 (0x65), region = 48  ;;  %355 = vst [vmem:[%s1604_s0] sm:$0xff] (!%p1167_p6), %v1464_v2  ;;  %356 = vst [vmem:[%s1604_s0 + $0x8] sm:$0xff] (!%p1167_p6), %v1464_v2 }
  0x65 PF: > { %s357_s21 = sld [smem:[#allocation7 + %s1555_s29]] }
  0x6b   : > { %p1168_p7 = scmp.ne.s32.totalorder %s357_s21, 1 }
  0x6c   : > { %v363_v3 = vld [vmem:[%s1593_s30 + $0x8] sm:$0xff] (!%p1168_p7)  ;;  %v362_v4 = vld [vmem:[%s1593_s30] sm:$0xff] (!%p1168_p7)  ;;  %vm381_vm0 = vcmask (!%p1168_p7), 64512   ;;  %v1465_v6 = vmov (!%p1168_p7), 0.0   ;;  %s719_s25 = sld [smem:[#allocation4 + %s1555_s29]] (!%p1168_p7)  ;;  %v1466_v7 = vmov (!%p1168_p7), 0  }
  0x6d   : > { %361 = sbr.rel (%p1168_p7) target bundleno = 606 (0x25e), region = 52  ;;  %v365_v5 = vld [vmem:[%s1943_s7] sm:$0xff] (!%p1168_p7)  ;;  %430 = vmatprep.subr.mxu0 (!%p1168_p7), %v363_v3  ;;  %494 = vmatprep.mubr.f32.mxu0 (!%p1168_p7), %v1465_v6  ;;  %v366_v8 = vld [vmem:[%s1943_s7 + $0x8] sm:$0xff] (!%p1168_p7)  ;;  %v367_v11 = vld [vmem:[%s1943_s7 + $0x10] sm:$0xff] (!%p1168_p7) }
  0x6e   : > { %431 = vmatpush1.msra.mxu0 (!%p1168_p7), %v362_v4  ;;  %1344 = vset.pattern.permute.xlu0 (!%p1168_p7), %v1466_v7  ;;  %v737_v9 = vld [vmem:[%s1602_s20 + $0x80] sm:$0xff] (!%p1168_p7)  ;;  %v738_v13 = vld [vmem:[%s1602_s20 + $0x88] sm:$0xff] (!%p1168_p7)  ;;  %v368_v18 = vld [vmem:[%s1943_s7 + $0x18] sm:$0xff] (!%p1168_p7) }
  0x6f   : > { %1169 = vmatmul.mubr.msk.f32.vlgmr.msra.gmra.mrb[0].mxu0 (!%p1168_p7), %vm381_vm0, %v365_v5  ;;  %1345 = vset.pattern.permute.xlu1 (!%p1168_p7), %v1466_v7  ;;  %v721_v10 = vld [vmem:[%s1602_s20] sm:$0xff] (!%p1168_p7)  ;;  %v722_v16 = vld [vmem:[%s1602_s20 + $0x8] sm:$0xff] (!%p1168_p7)  ;;  %v739_v20 = vld [vmem:[%s1602_s20 + $0x90] sm:$0xff] (!%p1168_p7) }
  0x70   : > { %500 = vmatprep.mubr.f32.mxu0 (!%p1168_p7), %v1465_v6  ;;  %v740_v21 = vld [vmem:[%s1602_s20 + $0x98] sm:$0xff] (!%p1168_p7)  ;;  %v369_v23 = vld [vmem:[%s1943_s7 + $0x20] sm:$0xff] (!%p1168_p7)  ;;  %v723_v25 = vld [vmem:[%s1602_s20 + $0x10] sm:$0xff] (!%p1168_p7) }
  0x71   : > { %v724_v26 = vld [vmem:[%s1602_s20 + $0x18] sm:$0xff] (!%p1168_p7)  ;;  %v370_v28 = vld [vmem:[%s1943_s7 + $0x28] sm:$0xff] (!%p1168_p7)  ;;  %v741_v30 = vld [vmem:[%s1602_s20 + $0xa0] sm:$0xff] (!%p1168_p7) }
  0x72   : > { %s1185_s11 = sshll.u32 (!%p1168_p7), %s719_s25, 7  ;;  %v742_v31 = vld [vmem:[%s1602_s20 + $0xa8] sm:$0xff] (!%p1168_p7)  ;;  %v371_v33 = vld [vmem:[%s1943_s7 + $0x30] sm:$0xff] (!%p1168_p7)  ;;  %v725_v35 = vld [vmem:[%s1602_s20 + $0x20] sm:$0xff] (!%p1168_p7) }
  0x73   : > { %1170 = vmatmul.mubr.msk.f32.gmra.mrb[2].mxu0 (!%p1168_p7), %vm381_vm0, %v366_v8  ;;  %v1632_v12 = vstv (!%p1168_p7), %s1185_s11  ;;  %v726_v36 = vld [vmem:[%s1602_s20 + $0x28] sm:$0xff] (!%p1168_p7)  ;;  %v372_v38 = vld [vmem:[%s1943_s7 + $0x38] sm:$0xff] (!%p1168_p7)  ;;  %v743_v40 = vld [vmem:[%s1602_s20 + $0xb0] sm:$0xff] (!%p1168_p7) }
  0x74   : > { %506 = vmatprep.mubr.f32.mxu0 %v1465_v6  ;;  %v770_v14 = vsub.s32 %v737_v9, %v1632_v12  ;;  %v754_v15 = vsub.s32 %v721_v10, %v1632_v12  ;;  %v771_v17 = vsub.s32 %v738_v13, %v1632_v12  ;;  %v755_v19 = vsub.s32 %v722_v16, %v1632_v12  ;;  %v744_v41 = vld [vmem:[%s1602_s20 + $0xb8] sm:$0xff]  ;;  %v373_v43 = vld [vmem:[%s1943_s7 + $0x40] sm:$0xff]  ;;  %v727_v45 = vld [vmem:[%s1602_s20 + $0x30] sm:$0xff] }
  0x75   : > { %v772_v22 = vsub.s32 %v739_v20, %v1632_v12  ;;  %v773_v24 = vsub.s32 %v740_v21, %v1632_v12  ;;  %v756_v27 = vsub.s32 %v723_v25, %v1632_v12  ;;  %v757_v29 = vsub.s32 %v724_v26, %v1632_v12  ;;  %v728_v46 = vld [vmem:[%s1602_s20 + $0x38] sm:$0xff]  ;;  %v374_v48 = vld [vmem:[%s1943_s7 + $0x48] sm:$0xff]  ;;  %v745_v50 = vld [vmem:[%s1602_s20 + $0xc0] sm:$0xff] }
  0x76   : > { %867 = vperm.xlu0 %1344, %v770_v14   ;;  %819 = vperm.xlu1 %1345, %v754_v15   ;;  %v774_v32 = vsub.s32 %v741_v30, %v1632_v12  ;;  %v775_v34 = vsub.s32 %v742_v31, %v1632_v12  ;;  %v758_v37 = vsub.s32 %v725_v35, %v1632_v12  ;;  %v746_v51 = vld [vmem:[%s1602_s20 + $0xc8] sm:$0xff]  ;;  %v375_v53 = vld [vmem:[%s1943_s7 + $0x50] sm:$0xff]  ;;  %v729_v55 = vld [vmem:[%s1602_s20 + $0x40] sm:$0xff] }
  0x77   : > { %1171 = vmatmul.mubr.msk.f32.gmra.mrb[4].mxu0 %vm381_vm0, %v367_v11  ;;  %v759_v39 = vsub.s32 %v726_v36, %v1632_v12  ;;  %v776_v42 = vsub.s32 %v743_v40, %v1632_v12  ;;  %v777_v44 = vsub.s32 %v744_v41, %v1632_v12  ;;  %v760_v47 = vsub.s32 %v727_v45, %v1632_v12  ;;  %v730_v56 = vld [vmem:[%s1602_s20 + $0x48] sm:$0xff]  ;;  %v376_v58 = vld [vmem:[%s1943_s7 + $0x58] sm:$0xff]  ;;  %v747_v60 = vld [vmem:[%s1602_s20 + $0xd0] sm:$0xff] }
  0x78   : > { %512 = vmatprep.mubr.f32.mxu0 %v1465_v6  ;;  %v761_v49 = vsub.s32 %v728_v46, %v1632_v12  ;;  %v778_v52 = vsub.s32 %v745_v50, %v1632_v12  ;;  %v779_v54 = vsub.s32 %v746_v51, %v1632_v12  ;;  %v762_v57 = vsub.s32 %v729_v55, %v1632_v12  ;;  %v748_v61 = vld [vmem:[%s1602_s20 + $0xd8] sm:$0xff]  ;;  %v377_v63 = vld [vmem:[%s1943_s7 + $0x60] sm:$0xff]  ;;  %v731_v1 = vld [vmem:[%s1602_s20 + $0x50] sm:$0xff] }
  0x79   : > { %v763_v59 = vsub.s32 %v730_v56, %v1632_v12  ;;  %v780_v62 = vsub.s32 %v747_v60, %v1632_v12  ;;  %v781_v0 = vsub.s32 %v748_v61, %v1632_v12  ;;  %v732_v2 = vld [vmem:[%s1602_s20 + $0x58] sm:$0xff]  ;;  %v764_v3 = vsub.s32 %v731_v1, %v1632_v12  ;;  %v378_v4 = vld [vmem:[%s1943_s7 + $0x68] sm:$0xff]  ;;  %v749_v8 = vld [vmem:[%s1602_s20 + $0xe0] sm:$0xff] }
  0x7a   : > { %870 = vperm.xlu0 %1344, %v771_v17   ;;  %822 = vperm.xlu1 %1345, %v755_v19   ;;  %v765_v5 = vsub.s32 %v732_v2, %v1632_v12  ;;  %v750_v9 = vld [vmem:[%s1602_s20 + $0xe8] sm:$0xff]  ;;  %v782_v10 = vsub.s32 %v749_v8, %v1632_v12  ;;  %v379_v11 = vld [vmem:[%s1943_s7 + $0x70] sm:$0xff]  ;;  %v733_v14 = vld [vmem:[%s1602_s20 + $0x60] sm:$0xff] }
  0x7b   : > { %1172 = vmatmul.mubr.msk.f32.gmra.mrb[6].mxu0 %vm381_vm0, %v368_v18  ;;  %v783_v13 = vsub.s32 %v750_v9, %v1632_v12  ;;  %v734_v15 = vld [vmem:[%s1602_s20 + $0x68] sm:$0xff]  ;;  %v766_v16 = vsub.s32 %v733_v14, %v1632_v12  ;;  %v380_v17 = vld [vmem:[%s1943_s7 + $0x78] sm:$0xff]  ;;  %v751_v19 = vld [vmem:[%s1602_s20 + $0xf0] sm:$0xff] }
  0x7c   : > { %518 = vmatprep.mubr.f32.mxu0 %v1465_v6  ;;  %v767_v18 = vsub.s32 %v734_v15, %v1632_v12  ;;  %v752_v20 = vld [vmem:[%s1602_s20 + $0xf8] sm:$0xff]  ;;  %v784_v21 = vsub.s32 %v751_v19, %v1632_v12  ;;  %v703_v26 = vld [vmem:[%s1944_s8] sm:$0xff]  ;;  %v804_v35 = vld [vmem:[#allocation2 + $0x90] sm:$0xff] }
  0x7d   : > { %v786_v30 = vld [vmem:[#allocation2] sm:$0xff]  ;;  %v805_v36 = vld [vmem:[#allocation2 + $0x98] sm:$0xff]  ;;  %v788_v40 = vld [vmem:[#allocation2 + $0x10] sm:$0xff] }
  0x7e   : > { %873 = vperm.xlu0 %1344, %v772_v22   ;;  %876 = vperm.xlu1 %1345, %v773_v24   ;;  %v785_v22 = vsub.s32 %v752_v20, %v1632_v12  ;;  %v736_v24 = vld [vmem:[%s1602_s20 + $0x78] sm:$0xff]  ;;  %v807_v45 = vld [vmem:[#allocation2 + $0xa8] sm:$0xff]  ;;  %v792_v56 = vld [vmem:[#allocation2 + $0x30] sm:$0xff] }
  0x7f   : > { %1173 = vmatmul.mubr.msk.f32.gmra.mrb[8].mxu0 %vm381_vm0, %v369_v23  ;;  %v735_v23 = vld [vmem:[%s1602_s20 + $0x70] sm:$0xff]  ;;  %v769_v25 = vsub.s32 %v736_v24, %v1632_v12  ;;  %v789_v41 = vld [vmem:[#allocation2 + $0x18] sm:$0xff]  ;;  %v810_v60 = vld [vmem:[#allocation2 + $0xc0] sm:$0xff] }
  0x80   : > { %524 = vmatprep.mubr.f32.mxu0 %v1465_v6  ;;  %v811_v61 = vld [vmem:[#allocation2 + $0xc8] sm:$0xff]  ;;  %v814_v15 = vld [vmem:[#allocation2 + $0xe0] sm:$0xff]  ;;  %v817_v24 = vld [vmem:[#allocation2 + $0xf8] sm:$0xff] }
  0x81   : > { %v795_v1 = vld [vmem:[#allocation2 + $0x48] sm:$0xff]  ;;  %v798_v19 = vld [vmem:[#allocation2 + $0x60] sm:$0xff] }
  0x82   : > { %825 = vperm.xlu0 %1344, %v756_v27   ;;  %828 = vperm.xlu1 %1345, %v757_v29   ;;  %v704_v27 = vld [vmem:[%s1944_s8 + $0x8] sm:$0xff] }
  0x83   : > { %1174 = vmatmul.mubr.msk.f32.gmra.mrb[10].mxu0 %vm381_vm0, %v370_v28  ;;  %v802_v28 = vld [vmem:[#allocation2 + $0x80] sm:$0xff]  ;;  %v799_v20 = vld [vmem:[#allocation2 + $0x68] sm:$0xff] }
  0x84   : > { %530 = vmatprep.mubr.f32.mxu0 %v1465_v6 }
  0x86   : > { %879 = vperm.xlu0 %1344, %v774_v32   ;;  %882 = vperm.xlu1 %1345, %v775_v34   ;;  %v803_v32 = vld [vmem:[#allocation2 + $0x88] sm:$0xff] }
  0x87   : > { %1175 = vmatmul.mubr.msk.f32.gmra.mrb[12].mxu0 %vm381_vm0, %v371_v33  ;;  %v787_v33 = vld [vmem:[#allocation2 + $0x8] sm:$0xff] }
  0x88   : > { %536 = vmatprep.mubr.f32.mxu0 %v1465_v6 }
  0x8a   : > { %831 = vperm.xlu0 %1344, %v758_v37   ;;  %834 = vperm.xlu1 %1345, %v759_v39   ;;  %v1467_v37 = vmov 1.0|1.0  }
  0x8b   : > { %1176 = vmatmul.mubr.msk.f32.gmra.mrb[14].mxu0 %vm381_vm0, %v372_v38 }
  0x8c   : > { %542 = vmatprep.mubr.f32.mxu0 %v1465_v6 }
  0x8e   : > { %885 = vperm.xlu0 %1344, %v776_v42   ;;  %888 = vperm.xlu1 %1345, %v777_v44   ;;  %v806_v44 = vld [vmem:[#allocation2 + $0xa0] sm:$0xff] }
  0x8f   : > { %1177 = vmatmul.mubr.msk.f32.gmra.mrb[16].mxu0 %vm381_vm0, %v373_v43 }
  0x90   : > { %548 = vmatprep.mubr.f32.mxu0 %v1465_v6 }
  0x92   : > { %837 = vperm.xlu0 %1344, %v760_v47   ;;  %840 = vperm.xlu1 %1345, %v761_v49   ;;  %v791_v49 = vld [vmem:[#allocation2 + $0x28] sm:$0xff] }
  0x93   : > { %1178 = vmatmul.mubr.msk.f32.gmra.mrb[18].mxu0 %vm381_vm0, %v374_v48  ;;  %v790_v48 = vld [vmem:[#allocation2 + $0x20] sm:$0xff] }
  0x94   : > { %554 = vmatprep.mubr.f32.mxu0 %v1465_v6 }
  0x96   : > { %891 = vperm.xlu0 %1344, %v778_v52   ;;  %894 = vperm.xlu1 %1345, %v779_v54   ;;  %v808_v52 = vld [vmem:[#allocation2 + $0xb0] sm:$0xff] }
  0x97   : > { %1179 = vmatmul.mubr.msk.f32.gmra.mrb[20].mxu0 %vm381_vm0, %v375_v53  ;;  %v809_v53 = vld [vmem:[#allocation2 + $0xb8] sm:$0xff] }
  0x98   : > { %560 = vmatprep.mubr.f32.mxu0 %v1465_v6 }
  0x9a   : > { %843 = vperm.xlu0 %1344, %v762_v57   ;;  %846 = vperm.xlu1 %1345, %v763_v59   ;;  %v793_v57 = vld [vmem:[#allocation2 + $0x38] sm:$0xff] }
  0x9b   : > { %1180 = vmatmul.mubr.msk.f32.gmra.mrb[22].mxu0 %vm381_vm0, %v376_v58 }
  0x9c   : > { %566 = vmatprep.mubr.f32.mxu0 %v1465_v6 }
  0x9e   : > { %897 = vperm.xlu0 %1344, %v780_v62   ;;  %900 = vperm.xlu1 %1345, %v781_v0   ;;  %v794_v0 = vld [vmem:[#allocation2 + $0x40] sm:$0xff] }
  0x9f   : > { %1181 = vmatmul.mubr.msk.f32.gmra.mrb[24].mxu0 %vm381_vm0, %v377_v63 }
  0xa0   : > { %572 = vmatprep.mubr.f32.mxu0 %v1465_v6 }
  0xa2   : > { %849 = vperm.xlu0 %1344, %v764_v3   ;;  %852 = vperm.xlu1 %1345, %v765_v5   ;;  %v813_v5 = vld [vmem:[#allocation2 + $0xd8] sm:$0xff] }
  0xa3   : > { %1182 = vmatmul.mubr.msk.f32.gmra.mrb[26].mxu0 %vm381_vm0, %v378_v4  ;;  %v812_v4 = vld [vmem:[#allocation2 + $0xd0] sm:$0xff] }
  0xa4   : > { %578 = vmatprep.mubr.f32.mxu0 %v1465_v6 }
  0xa6   : > { %903 = vperm.xlu0 %1344, %v782_v10   ;;  %906 = vperm.xlu1 %1345, %v783_v13   ;;  %v796_v10 = vld [vmem:[#allocation2 + $0x50] sm:$0xff] }
  0xa7   : > { %1183 = vmatmul.mubr.msk.f32.gmra.mrb[28].mxu0 %vm381_vm0, %v379_v11  ;;  %v797_v11 = vld [vmem:[#allocation2 + $0x58] sm:$0xff] }
  0xa8   : > { %584 = vmatprep.mubr.f32.mxu0 %v1465_v6  ;;  %v768_v6 = vsub.s32 %v735_v23, %v1632_v12  ;;  %v816_v23 = vld [vmem:[#allocation2 + $0xf0] sm:$0xff] }
  0xaa   : > { %855 = vperm.xlu0 %1344, %v766_v16   ;;  %858 = vperm.xlu1 %1345, %v767_v18   ;;  %v815_v16 = vld [vmem:[#allocation2 + $0xe8] sm:$0xff] }
  0xab   : > { %1184 = vmatmul.mubr.msk.f32.gmra.mrb[30].mxu0 %vm381_vm0, %v380_v17 }
  0xae   : > { %909 = vperm.xlu0 %1344, %v784_v21   ;;  %912 = vperm.xlu1 %1345, %v785_v22  }
  0xb2   : > { %861 = vperm.xlu0 %1344, %v768_v6   ;;  %864 = vperm.xlu1 %1345, %v769_v25  }
  0xb6   : > { %707 = vperm.xlu0 %1344, %v703_v26   ;;  %712 = vperm.xlu1 %1345, %v704_v27   ;;  %v800_v26 = vld [vmem:[#allocation2 + $0x70] sm:$0xff]  ;;  %v801_v27 = vld [vmem:[#allocation2 + $0x78] sm:$0xff] }
  0xf5   : > { %v868_v29 = vpop.permute.xlu0 %867  ;;  %v820_v31 = vpop.permute.xlu1 %819 }
  0xf6   : > { %vm930_vm1 = vcmp.eq.s32.totalorder %v868_v29, %v802_v28  ;;  %vm914_vm2 = vcmp.eq.s32.totalorder %v820_v31, %v786_v30  ;;  %v593_v30 = vlaneseq  ;;  %v1789_v31 = vld [vmem:[%s300_s15] sm:$0x3] }
  0xf9   : > { %v871_v12 = vpop.permute.xlu0 %870  ;;  %v823_v34 = vpop.permute.xlu1 %822 }
  0xfa   : > { %vm931_vm3 = vcmp.eq.s32.totalorder %v871_v12, %v803_v32  ;;  %vm915_vm4 = vcmp.eq.s32.totalorder %v823_v34, %v787_v33  ;;  %v594_v32 = vshrl.u32 %v593_v30, 7 }
  0xfb   : > { %vm1260_vm5 = vmpackc.low %vm931_vm3, %vm930_vm1 }
  0xfc   : > { %vm1262_vm6 = vmpackc.low %vm915_vm4, %vm914_vm2  ;;  %1261 = vmatprep.subr.msk.bf16.mxu1 %vm1260_vm5, %v1467_v37  ;;  %v1792_v33 = vsub.s32 0, %v594_v32  ;;  %v1795_v34 = vsub.s32 1, %v594_v32 }
  0xfd   : > { %v874_v38 = vpop.permute.xlu0 %873  ;;  %1263 = vmatpush3.bf16.msk.msra.mxu1 %vm1262_vm6, %v1467_v37  ;;  %v877_v39 = vpop.permute.xlu1 %876 }
  0xfe   : > { %vm932_vm7 = vcmp.eq.s32.totalorder %v874_v38, %v804_v35  ;;  %vm933_vm8 = vcmp.eq.s32.totalorder %v877_v39, %v805_v36 }
  0xff   : > { %vm1264_vm9 = vmpackc.low %vm933_vm8, %vm932_vm7 }
 0x100   : > { %1265 = vmatprep.subr.msk.bf16.mxu1 %vm1264_vm9, %v1467_v37 }
 0x101   : > { %v826_v42 = vpop.permute.xlu0 %825  ;;  %v829_v43 = vpop.permute.xlu1 %828 }
 0x102   : > { %vm916_vm10 = vcmp.eq.s32.totalorder %v826_v42, %v788_v40  ;;  %vm917_vm11 = vcmp.eq.s32.totalorder %v829_v43, %v789_v41 }
 0x103   : > { %vm1266_vm12 = vmpackc.low %vm917_vm11, %vm916_vm10 }
 0x104   : > { %1267 = vmatpush3.bf16.msk.msra.mxu1 %vm1266_vm12, %v1467_v37 }
 0x105   : > { %v880_v46 = vpop.permute.xlu0 %879  ;;  %v883_v47 = vpop.permute.xlu1 %882 }
 0x106   : > { %vm934_vm13 = vcmp.eq.s32.totalorder %v880_v46, %v806_v44  ;;  %vm935_vm14 = vcmp.eq.s32.totalorder %v883_v47, %v807_v45 }
 0x107   : > { %vm1268_vm15 = vmpackc.low %vm935_vm14, %vm934_vm13 }
 0x108   : > { %1269 = vmatprep.subr.msk.bf16.mxu1 %vm1268_vm15, %v1467_v37 }
 0x109   : > { %v832_v50 = vpop.permute.xlu0 %831  ;;  %v835_v51 = vpop.permute.xlu1 %834 }
 0x10a   : > { %vm918_vm0 = vcmp.eq.s32.totalorder %v832_v50, %v790_v48  ;;  %vm919_vm1 = vcmp.eq.s32.totalorder %v835_v51, %v791_v49 }
 0x10b   : > { %vm1270_vm2 = vmpackc.low %vm919_vm1, %vm918_vm0 }
 0x10c   : > { %1271 = vmatpush3.bf16.msk.msra.mxu1 %vm1270_vm2, %v1467_v37 }
 0x10d   : > { %v886_v54 = vpop.permute.xlu0 %885  ;;  %v889_v55 = vpop.permute.xlu1 %888 }
 0x10e   : > { %vm936_vm3 = vcmp.eq.s32.totalorder %v886_v54, %v808_v52  ;;  %vm937_vm4 = vcmp.eq.s32.totalorder %v889_v55, %v809_v53 }
 0x10f   : > { %vm1272_vm5 = vmpackc.low %vm937_vm4, %vm936_vm3 }
 0x110   : > { %1273 = vmatprep.subr.msk.bf16.mxu1 %vm1272_vm5, %v1467_v37 }
 0x111   : > { %v838_v58 = vpop.permute.xlu0 %837  ;;  %v841_v59 = vpop.permute.xlu1 %840 }
 0x112   : > { %vm920_vm6 = vcmp.eq.s32.totalorder %v838_v58, %v792_v56  ;;  %vm921_vm7 = vcmp.eq.s32.totalorder %v841_v59, %v793_v57 }
 0x113   : > { %vm1274_vm8 = vmpackc.low %vm921_vm7, %vm920_vm6 }
 0x114   : > { %1275 = vmatpush3.bf16.msk.msra.mxu1 %vm1274_vm8, %v1467_v37 }
 0x115   : > { %v892_v62 = vpop.permute.xlu0 %891  ;;  %v895_v63 = vpop.permute.xlu1 %894 }
 0x116   : > { %vm938_vm9 = vcmp.eq.s32.totalorder %v892_v62, %v810_v60  ;;  %vm939_vm10 = vcmp.eq.s32.totalorder %v895_v63, %v811_v61 }
 0x117   : > { %vm1276_vm11 = vmpackc.low %vm939_vm10, %vm938_vm9 }
 0x118   : > { %1277 = vmatprep.subr.msk.bf16.mxu1 %vm1276_vm11, %v1467_v37 }
 0x119   : > { %v844_v2 = vpop.permute.xlu0 %843  ;;  %v847_v3 = vpop.permute.xlu1 %846 }
 0x11a   : > { %vm922_vm12 = vcmp.eq.s32.totalorder %v844_v2, %v794_v0  ;;  %vm923_vm13 = vcmp.eq.s32.totalorder %v847_v3, %v795_v1  ;;  %v978_v1 = vld [vmem:[%s1604_s0] sm:$0xff] }
 0x11b   : > { %vm1278_vm14 = vmpackc.low %vm923_vm13, %vm922_vm12 }
 0x11c   : > { %1279 = vmatpush3.bf16.msk.msra.mxu1 %vm1278_vm14, %v1467_v37 }
 0x11d   : > { %v898_v8 = vpop.permute.xlu0 %897  ;;  %v901_v9 = vpop.permute.xlu1 %900 }
 0x11e   : > { %vm940_vm15 = vcmp.eq.s32.totalorder %v898_v8, %v812_v4  ;;  %vm941_vm0 = vcmp.eq.s32.totalorder %v901_v9, %v813_v5 }
 0x11f   : > { %vm1280_vm1 = vmpackc.low %vm941_vm0, %vm940_vm15 }
 0x120   : > { %1281 = vmatprep.subr.msk.bf16.mxu1 %vm1280_vm1, %v1467_v37  ;;  %vm591_vm1 = vcmp.eq.s32.totalorder %v1789_v31, 1 }
 0x121   : > { %v850_v13 = vpop.permute.xlu0 %849  ;;  %v853_v14 = vpop.permute.xlu1 %852  ;;  %v592_v12 = vsel %vm591_vm1, 1, %v1466_v7  ;;  %vm687_vm1 = vcmp.eq.s32.totalorder %v1789_v31, 7 }
 0x122   : > { %vm924_vm2 = vcmp.eq.s32.totalorder %v850_v13, %v796_v10  ;;  %vm925_vm3 = vcmp.eq.s32.totalorder %v853_v14, %v797_v11  ;;  %v600_v38 = vrot.slane %v592_v12, %v1795_v34  ;;  %v688_v42 = vsel %vm687_vm1, 1, %v1466_v7 }
 0x123   : > { %vm1282_vm4 = vmpackc.low %vm925_vm3, %vm924_vm2  ;;  %vm607_vm2 = vcmp.eq.s32.totalorder %v1789_v31, 2 }
 0x124   : > { %1283 = vmatpush3.bf16.msk.msra.mxu1 %vm1282_vm4, %v1467_v37  ;;  %vm1804_vm4 = vcmp.eq.s32.totalorder %v600_v38, 1  ;;  %v608_v43 = vsel %vm607_vm2, 1, %v1466_v7 }
 0x125   : > { %v904_v17 = vpop.permute.xlu0 %903  ;;  %v907_v18 = vpop.permute.xlu1 %906  ;;  %v612_v48 = vrot.slane %v608_v43, %v1792_v33  ;;  %v616_v49 = vrot.slane %v608_v43, %v1795_v34 }
 0x126   : > { %vm942_vm5 = vcmp.eq.s32.totalorder %v904_v17, %v814_v15  ;;  %vm943_vm6 = vcmp.eq.s32.totalorder %v907_v18, %v815_v16 }
 0x127   : > { %vm1284_vm7 = vmpackc.low %vm943_vm6, %vm942_vm5  ;;  %vm623_vm5 = vcmp.eq.s32.totalorder %v1789_v31, 3  ;;  %vm617_vm6 = vcmp.eq.s32.totalorder %v612_v48, 1  ;;  %v696_v48 = vrot.slane %v688_v42, %v1795_v34 }
 0x128   : > { %1285 = vmatprep.subr.msk.bf16.mxu1 %vm1284_vm7, %v1467_v37  ;;  %vm618_vm7 = vcmp.eq.s32.totalorder %v616_v49, 1  ;;  %v624_v54 = vsel %vm623_vm5, 1, %v1466_v7 }
 0x129   : > { %v856_v21 = vpop.permute.xlu0 %855  ;;  %v859_v22 = vpop.permute.xlu1 %858  ;;  %v628_v59 = vrot.slane %v624_v54, %v1792_v33  ;;  %v632_v60 = vrot.slane %v624_v54, %v1795_v34  ;;  %vm698_vm5 = vcmp.eq.s32.totalorder %v696_v48, 1 }
 0x12a   : > { %vm926_vm8 = vcmp.eq.s32.totalorder %v856_v21, %v798_v19  ;;  %vm927_vm9 = vcmp.eq.s32.totalorder %v859_v22, %v799_v20 }
 0x12b   : > { %vm1286_vm10 = vmpackc.low %vm927_vm9, %vm926_vm8  ;;  %vm639_vm8 = vcmp.eq.s32.totalorder %v1789_v31, 4  ;;  %vm1824_vm9 = vcmp.eq.s32.totalorder %v628_v59, 1 }
 0x12c   : > { %1287 = vmatpush3.bf16.msk.msra.mxu1 %vm1286_vm10, %v1467_v37  ;;  %vm1828_vm10 = vcmp.eq.s32.totalorder %v632_v60, 1  ;;  %v640_v3 = vsel %vm639_vm8, 1, %v1466_v7 }
 0x12d   : > { %v910_v6 = vpop.permute.xlu0 %909  ;;  %v913_v25 = vpop.permute.xlu1 %912  ;;  %v644_v10 = vrot.slane %v640_v3, %v1792_v33  ;;  %v648_v11 = vrot.slane %v640_v3, %v1795_v34 }
 0x12e   : > { %vm944_vm11 = vcmp.eq.s32.totalorder %v910_v6, %v816_v23  ;;  %vm945_vm12 = vcmp.eq.s32.totalorder %v913_v25, %v817_v24 }
 0x12f   : > { %vm1288_vm13 = vmpackc.low %vm945_vm12, %vm944_vm11  ;;  %vm655_vm11 = vcmp.eq.s32.totalorder %v1789_v31, 5  ;;  %vm649_vm12 = vcmp.eq.s32.totalorder %v644_v10, 1 }
 0x130   : > { %1289 = vmatprep.subr.msk.bf16.mxu1 %vm1288_vm13, %v1467_v37  ;;  %vm650_vm13 = vcmp.eq.s32.totalorder %v648_v11, 1  ;;  %v656_v17 = vsel %vm655_vm11, 1, %v1466_v7 }
 0x131   : > { %v862_v28 = vpop.permute.xlu0 %861  ;;  %v865_v29 = vpop.permute.xlu1 %864  ;;  %v660_v22 = vrot.slane %v656_v17, %v1792_v33  ;;  %v664_v23 = vrot.slane %v656_v17, %v1795_v34 }
 0x132   : > { %vm928_vm14 = vcmp.eq.s32.totalorder %v862_v28, %v800_v26  ;;  %vm929_vm15 = vcmp.eq.s32.totalorder %v865_v29, %v801_v27 }
 0x133   : > { %vm1290_vm0 = vmpackc.low %vm929_vm15, %vm928_vm14  ;;  %vm671_vm14 = vcmp.eq.s32.totalorder %v1789_v31, 6  ;;  %vm1848_vm15 = vcmp.eq.s32.totalorder %v660_v22, 1 }
 0x134   : > { %1291 = vmatpush3.bf16.msk.msra.mxu1 %vm1290_vm0, %v1467_v37  ;;  %v596_v37 = vrot.slane %v592_v12, %v1792_v33  ;;  %vm1852_vm0 = vcmp.eq.s32.totalorder %v664_v23, 1  ;;  %v672_v29 = vsel %vm671_vm14, 1, %v1466_v7 }
 0x135   : > { %v713_v60 = vpop.permute.xlu1 %712 }
 0x136   : > { %vm1800_vm3 = vcmp.eq.s32.totalorder %v596_v37, 1  ;;  %v680_v37 = vrot.slane %v672_v29, %v1795_v34 }
 0x142   : > { %v496_v35 = vpop.f32.mrb[0].mxu0 }
 0x143   : > { %v498_v36 = vpop.f32.mrb[1].mxu0 }
 0x146   : > { %v502_v39 = vpop.f32.mrb[2].mxu0 }
 0x147   : > { %v504_v40 = vpop.f32.mrb[3].mxu0 }
 0x14a   : > { %v508_v44 = vpop.f32.mrb[4].mxu0 }
 0x14b   : > { %v603_v45 = vsel %vm1800_vm3, %v508_v44, %v496_v35  ;;  %v510_v46 = vpop.f32.mrb[5].mxu0 }
 0x14c   : > { %v604_v47 = vsel %vm1804_vm4, %v510_v46, %v498_v36  ;;  %v676_v36 = vrot.slane %v672_v29, %v1792_v33 }
 0x14e   : > { %v514_v50 = vpop.f32.mrb[6].mxu0  ;;  %vm681_vm2 = vcmp.eq.s32.totalorder %v676_v36, 1 }
 0x14f   : > { %v605_v51 = vsel %vm1800_vm3, %v514_v50, %v502_v39  ;;  %v516_v52 = vpop.f32.mrb[7].mxu0  ;;  %vm682_vm3 = vcmp.eq.s32.totalorder %v680_v37, 1 }
 0x150   : > { %v606_v53 = vsel %vm1804_vm4, %v516_v52, %v504_v40 }
 0x152   : > { %v520_v55 = vpop.f32.mrb[8].mxu0 }
 0x153   : > { %v619_v56 = vsel %vm617_vm6, %v520_v55, %v603_v45  ;;  %v522_v57 = vpop.f32.mrb[9].mxu0  ;;  %v708_v55 = vpop.permute.xlu0 %707 }
 0x154   : > { %v620_v58 = vsel %vm618_vm7, %v522_v57, %v604_v47  ;;  %v692_v47 = vrot.slane %v688_v42, %v1792_v33 }
 0x156   : > { %v526_v61 = vpop.f32.mrb[10].mxu0  ;;  %vm1871_vm4 = vcmp.eq.s32.totalorder %v692_v47, 1 }
 0x157   : > { %v621_v62 = vsel %vm617_vm6, %v526_v61, %v605_v51  ;;  %v528_v63 = vpop.f32.mrb[11].mxu0 }
 0x158   : > { %v622_v0 = vsel %vm618_vm7, %v528_v63, %v606_v53 }
 0x15a   : > { %v532_v4 = vpop.f32.mrb[12].mxu0 }
 0x15b   : > { %v635_v5 = vsel %vm1824_vm9, %v532_v4, %v619_v56  ;;  %v534_v8 = vpop.f32.mrb[13].mxu0 }
 0x15c   : > { %v636_v9 = vsel %vm1828_vm10, %v534_v8, %v620_v58  ;;  %v979_v8 = vld [vmem:[%s1604_s0 + $0x8] sm:$0xff] }
 0x15e   : > { %v538_v13 = vpop.f32.mrb[14].mxu0 }
 0x15f   : > { %v637_v14 = vsel %vm1824_vm9, %v538_v13, %v621_v62  ;;  %v540_v15 = vpop.f32.mrb[15].mxu0 }
 0x160   : > { %v638_v16 = vsel %vm1828_vm10, %v540_v15, %v622_v0 }
 0x162   : > { %v544_v18 = vpop.f32.mrb[16].mxu0 }
 0x163   : > { %v651_v19 = vsel %vm649_vm12, %v544_v18, %v635_v5  ;;  %v546_v20 = vpop.f32.mrb[17].mxu0 }
 0x164   : > { %v652_v21 = vsel %vm650_vm13, %v546_v20, %v636_v9 }
 0x166   : > { %v550_v24 = vpop.f32.mrb[18].mxu0 }
 0x167   : > { %v653_v6 = vsel %vm649_vm12, %v550_v24, %v637_v14  ;;  %v552_v25 = vpop.f32.mrb[19].mxu0 }
 0x168   : > { %v654_v26 = vsel %vm650_vm13, %v552_v25, %v638_v16 }
 0x16a   : > { %v556_v30 = vpop.f32.mrb[20].mxu0 }
 0x16b   : > { %v667_v32 = vsel %vm1848_vm15, %v556_v30, %v651_v19  ;;  %v558_v12 = vpop.f32.mrb[21].mxu0 }
 0x16c   : > { %v668_v35 = vsel %vm1852_vm0, %v558_v12, %v652_v21 }
 0x16e   : > { %v562_v38 = vpop.f32.mrb[22].mxu0 }
 0x16f   : > { %v669_v39 = vsel %vm1848_vm15, %v562_v38, %v653_v6  ;;  %v564_v40 = vpop.f32.mrb[23].mxu0 }
 0x170   : > { %v670_v41 = vsel %vm1852_vm0, %v564_v40, %v654_v26 }
 0x172   : > { %v568_v43 = vpop.f32.mrb[24].mxu0 }
 0x173   : > { %v683_v44 = vsel %vm681_vm2, %v568_v43, %v667_v32  ;;  %v570_v45 = vpop.f32.mrb[25].mxu0 }
 0x174   : > { %v684_v46 = vsel %vm682_vm3, %v570_v45, %v668_v35 }
 0x176   : > { %v574_v31 = vpop.f32.mrb[26].mxu0 }
 0x177   : > { %v685_v49 = vsel %vm681_vm2, %v574_v31, %v669_v39  ;;  %v576_v50 = vpop.f32.mrb[27].mxu0 }
 0x178   : > { %v686_v51 = vsel %vm682_vm3, %v576_v50, %v670_v41 }
 0x17a   : > { %v580_v53 = vpop.f32.mrb[28].mxu0 }
 0x17b   : > { %v699_v7 = vsel %vm1871_vm4, %v580_v53, %v683_v44  ;;  %v582_v54 = vpop.f32.mrb[29].mxu0 }
 0x17c   : > { %v700_v56 = vsel %vm698_vm5, %v582_v54, %v684_v46  ;;  %v715_v57 = vadd.f32 %v708_v55, %v699_v7 }
 0x17d   : > { %v716_v33 = vadd.f32 %v708_v55, %v700_v56 }
 0x17e   : > { %v586_v34 = vpop.f32.mrb[30].mxu0 }
 0x17f   : > { %v701_v58 = vsel %vm1871_vm4, %v586_v34, %v685_v49  ;;  %v588_v59 = vpop.f32.mrb[31].mxu0  ;;  %1044 = vmatprep.mubr.f32.mxu1 %v716_v33 }
 0x180   : > { %v702_v61 = vsel %vm698_vm5, %v588_v59, %v686_v51  ;;  %1045 = vmatmul.mubr.f32.vlgmr.msra.gmra.mrb[0].mxu1 %v715_v57  ;;  %v717_v63 = vadd.f32 %v713_v60, %v701_v58 }
 0x181   : > { %v718_v62 = vadd.f32 %v713_v60, %v702_v61 }
 0x183   : > { %1049 = vmatprep.mubr.f32.mxu1 %v718_v62 }
 0x184   : > { %1050 = vmatmul.mubr.f32.gmra.mrb[2].mxu1 %v717_v63 }
 0x253   : > { %v1254_v0 = vpop.f32.mrb[0].mxu1 }
 0x254   : > { %v1255_v2 = vpop.f32.mrb[1].mxu1 }
 0x255   : > { %v1256_v3 = vadd.f32 %v1255_v2, %v1254_v0 }
 0x257   : > { %v1055_v4 = vadd.f32 %v1256_v3, %v978_v1  ;;  %v1257_v5 = vpop.f32.mrb[2].mxu1 }
 0x258   : > { %v1258_v9 = vpop.f32.mrb[3].mxu1 }
 0x259   : > { %1057 = vst [vmem:[%s1604_s0] sm:$0xff] %v1055_v4  ;;  %v1259_v10 = vadd.f32 %v1258_v9, %v1257_v5 }
 0x25b   : > { %v1056_v11 = vadd.f32 %v1259_v10, %v979_v8 }
 0x25d   : > { %1058 = vst [vmem:[%s1604_s0 + $0x8] sm:$0xff] %v1056_v11 }
 0x25e PF: > { %s1292_s22 = scalar_select %p1568_p10, [#allocation4], [#allocation10] }
 0x25f   : > { %s1978_s29 = smov (!%p1568_p10, %s1555_s29), 0  ;;  %s1073_s2 = sshll.u32 %s1604_s0, 4  ;;  %s1889_s2 = int_to_ptr.vmem [resolvable:$true] %s1073_s2 }
 0x260   : > { %s1067_s15 = sld [smem:[%s1292_s22 + %s1978_s29]]  ;;  %s1966_s1 = sand.u32 1, %s1450_s26  }
 0x261   : > { %s1898_s19 = scalar_lea.sflag [#allocation9], %s1966_s1  ;;  %s1394_s18 = scalar_lea.vmem %s1889_s2, 256 }
 0x262   : > { %p1395_p8 = scmp.ne.s32.totalorder %s1889_s2, %s1394_s18  ;;  %s1468_s29 = smov [#allocation8]  }
 0x263   : > { %s1398_s0 = sshll.u32 %s1468_s29, 4  ;;  %s1399_s0 = int_to_ptr.vmem [resolvable:$false] %s1398_s0 }
 0x264   : > { %p1396_p9 = pnand %p1395_p8, %p1568_p10  ;;  %s1400_s21 = scalar_lea.vmem %s1399_s0, 512 }
 0x265   : > { %p1401_p13 = scmp.lt.s32.totalorder %s1889_s2, %s1399_s0  ;;  %p1402_p0 = scmp.lt.s32.totalorder %s1400_s21, %s1394_s18 }
 0x266   : > { %s1219_s30 = sshll.u32 %s1067_s15, 7  ;;  %p1397_p11 = pneg %p1396_p9 }
 0x267   : > { %s1894_s16 = scalar_lea.hbm %s1945_s9, %s1219_s30  ;;  %p1403_p1 = por %p1402_p0, %p1401_p13 }
 0x269   : > { %p1404_p2 = pnand %p1403_p1, %p1397_p11 }
 0x26b   : > { %1407 = shalt.err (!%p1404_p2)
}
 0x26c   : > { %s1408_s23 = scalar_lea.hbm %s1894_s16, 256  ;;  %s1412_s25 = scalar_lea.hbm %s1945_s9, 1024 }
 0x26d   : > { %p1409_p3 = scmp.ne.s32.totalorder %s1894_s16, %s1408_s23  ;;  %p1413_p6 = scmp.lt.u32.totalorder %s1894_s16, %s1945_s9 }
 0x26e   : > { %p1414_p7 = scmp.lt.u32.totalorder %s1412_s25, %s1408_s23  ;;  %p1416_p9 = scmp.lt.u32.totalorder %s1408_s23, %s1894_s16 }
 0x26f   : > { %p1410_p4 = pnand %p1409_p3, %p1568_p10 }
 0x270   : > { %p1415_p8 = por %p1414_p7, %p1413_p6 }
 0x271   : > { %p1411_p5 = pneg %p1410_p4 }
 0x272   : > { %p1417_p11 = por %p1416_p9, %p1415_p8 }
 0x274   : > { %p1418_p13 = pnand %p1417_p11, %p1411_p5 }
 0x276   : > { %1421 = shalt.err (!%p1418_p13)
}
 0x277   : > { %s1469_s30 = smov 128   ;;  %s1470_s11 = smov 512  }
 0x278   : > { %s1471_s12 = smov 8  }
 0x279   : > { %1294 = dma.vmem_to_hbm [thread:$0]  (%p1568_p10), %s1889_s2, 256, %s1894_s16, %s1898_s19, %s1469_s30, %s1470_s11, %s1471_s12  }
 0x27a PF: > { %p1300_p0 = scmp.ge.s32.totalorder %s1458_s28, 2  ;;  %s1088_s1 = sand.u32 1, %s1446_s3  }
 0x27b   : > { %s1089_s18 = scalar_lea.sflag [#allocation9], %s1088_s1 }
 0x27c   : > { %p1297_p1 = pnand %p1300_p0, %p1573_p12 }
 0x27e   : > { %1441 = dma.done.wait (!%p1297_p1), %s1089_s18, 256  }
 0x27f   : > { %1443 = vsyncadd (!%p1297_p1), %s1089_s18, 4294967040  ;;  %p37_p2 = scmp.ge.s32.totalorder %s1559_s10, 8   ;;  %s1967_s3 = smov %s1450_s26 }
 0x280   : > { %s1968_s26 = smov %s1454_s27  ;;  %s1969_s27 = smov %s1580_s17 }
 0x281   : > { %s1970_s28 = smov %s1559_s10  ;;  %39 = sbr.rel (!%p37_p2) target bundleno = 49 (0x31), region = 93 }
 0x288   :  { %1094 = vsyncpa [#allocation9], 1 }
 0x289   :  { %1096 = vsyncpa [#allocation9 + $0x1], 1 }

</bundles_post_ra>
